<compile_context>
chip_gen: v6e
topology: v6e:2x2x1
jax: 0.10.0
libtpu: 0.0.40
codegen_flags: <defaults>
</compile_context>

<pallas_src>
import functools

import jax
import jax.numpy as jnp
from jax import lax
from jax.experimental import pallas as pl
from jax.experimental.pallas import tpu as pltpu


def _round_up(n, m):
    return (n + m - 1) // m * m


def _vmem_budget():
    """Per-block budget and scoped-VMEM cap, chosen per TPU generation."""
    cap = None
    try:
        cap = getattr(pltpu.get_tpu_info(), "vmem_capacity_bytes", None)
    except Exception:
        cap = None
    if cap is None:
        cap = 64 << 20                       # conservative: assume v7x-sized VMEM
    if cap >= (96 << 20):
        # v5e / v6e: 128 MiB VMEM -> larger streaming blocks (longer DMAs).
        return 14 << 20, 96 << 20
    # v7x: 64 MiB VMEM -> ~6 MiB blocks, leave headroom below the physical cap.
    return 6 << 20, 48 << 20


# ----------------------------------------------------------------------------
# Fused single-pass path (spatial extent fits in one block per row tile).
# ----------------------------------------------------------------------------

def _adain_kernel(x_ref, wb_ref, o_ref, *, eps, tr, inv_hw, n_pad, wb_resident):
    # x_ref: (TR, HW_pad)   wb_ref: resident (WB_rows, 2) or per-step (TR, 2)
    x = x_ref[...]
    xf = x.astype(jnp.float32)

    # Pass 1: mean. Zero pad-columns contribute 0; inv_hw = 1 / true H*W.
    mean = jnp.sum(xf, axis=-1, keepdims=True) * inv_hw
    # Pass 2 over the VMEM-resident tile: centered variance (avoids the
    # E[x^2] - mean^2 cancellation). Pad columns contribute mean^2 each; remove.
    centered = xf - mean
    sq = jnp.sum(centered * centered, axis=-1, keepdims=True)
    if n_pad:
        sq = sq - (float(n_pad) * mean) * mean
    var = jnp.maximum(sq * inv_hw, 0.0)        # biased variance (F.batch_norm)
    inv = lax.rsqrt(var + eps)                 # EUP slot, effectively free

    if wb_resident:
        start = pl.multiple_of(pl.program_id(0) * tr, tr)
        wb = wb_ref[pl.ds(start, tr), :]       # aligned slice of resident table
    else:
        wb = wb_ref[...]
    w = wb[:, 0:1]
    b = wb[:, 1:2]
    scale = inv * w
    shift = b - mean * scale

    if x.dtype == jnp.float32:
        o_ref[...] = (xf * scale + shift).astype(o_ref.dtype)
    else:
        # Keep the widest pass in the native 16-bit dtype (stats stayed f32).
        o_ref[...] = (x * scale.astype(x.dtype) + shift.astype(x.dtype)).astype(o_ref.dtype)


def _select_row_tile(rows, hw_pad, itemsize, sublane, block_budget):
    """Row tile TR: multiple of `sublane`, block <= budget, >= ~4 grid steps."""
    row_bytes = hw_pad * itemsize
    tr = (block_budget // max(row_bytes, 1)) // sublane * sublane
    tr = max(sublane, tr)
    tr = min(tr, _round_up(rows, sublane))
    # Prefer >= 4 grid steps (pipeline depth + v7x 2-TC megacore split). The
    # ~0.35us per-step overhead is small vs. per-block DMA time.
    target_steps = 4
    if rows > sublane:
        tr_steps = _round_up(-(-rows // target_steps), sublane)
        tr = min(tr, max(sublane, tr_steps))
    return tr


def _adain_fused(xr, wb, eps, rows, hw, hw_pad, itemsize, sublane,
                 block_budget, vmem_cap, dtype):
    n_pad = hw_pad - hw
    if n_pad:
        # Lane-dense layout: zero-pad spatial axis to a multiple of 128. Stats
        # use the true H*W (zeros are neutral for the sum; variance corrected).
        xr = jnp.pad(xr, ((0, 0), (0, n_pad)))

    tr = _select_row_tile(rows, hw_pad, itemsize, sublane, block_budget)
    grid_rows = pl.cdiv(rows, tr)

    # Keep weight/bias resident in VMEM unless the table is large.
    wb_rows = grid_rows * tr
    wb_resident = wb_rows <= 4096
    if wb_resident:
        if wb_rows != rows:
            wb = jnp.pad(wb, ((0, wb_rows - rows), (0, 0)))   # tiny pad only
        wb_spec = pl.BlockSpec((wb_rows, 2), lambda i: (0, 0))
        wb_vmem = wb_rows * 512 * 2
    else:
        wb_spec = pl.BlockSpec((tr, 2), lambda i: (i, 0))
        wb_vmem = tr * 512 * 2

    block_bytes = tr * hw_pad * itemsize
    vmem_limit = int(min(vmem_cap,
                         max(32 << 20, 4 * block_bytes + wb_vmem + (4 << 20))))

    cost = pl.CostEstimate(
        flops=8 * rows * hw_pad,
        transcendentals=rows,
        bytes_accessed=2 * rows * hw_pad * itemsize + wb_rows * 8,
    )

    out = pl.pallas_call(
        functools.partial(_adain_kernel, eps=eps, tr=tr, inv_hw=1.0 / float(hw),
                          n_pad=n_pad, wb_resident=wb_resident),
        out_shape=jax.ShapeDtypeStruct((rows, hw_pad), dtype),
        grid_spec=pltpu.PrefetchScalarGridSpec(
            num_scalar_prefetch=0,
            grid=(grid_rows,),
            in_specs=[
                pl.BlockSpec((tr, hw_pad), lambda i: (i, 0)),
                wb_spec,
            ],
            out_specs=pl.BlockSpec((tr, hw_pad), lambda i: (i, 0)),
        ),
        compiler_params=pltpu.CompilerParams(
            dimension_semantics=("parallel",),
            vmem_limit_bytes=vmem_limit,
        ),
        cost_estimate=cost,
    )(xr, wb)

    if n_pad:
        out = out[:, :hw]
    return out


# ----------------------------------------------------------------------------
# Two-pass fallback for very large spatial extents (HW split across grid axis).
# ----------------------------------------------------------------------------

def _stats_kernel(x_ref, wb_ref, ss_ref, sum_sc, sq_sc, *, eps, inv_hw, hw_true, thw):
    j = pl.program_id(1)

    @pl.when(j == 0)
    def _():
        sum_sc[...] = jnp.zeros_like(sum_sc)
        sq_sc[...] = jnp.zeros_like(sq_sc)

    xf = x_ref[...].astype(jnp.float32)
    # Mask columns beyond the true H*W on the (possibly partial) last HW tile.
    col = j * thw + lax.broadcasted_iota(jnp.int32, xf.shape, 1)
    xf = jnp.where(col < hw_true, xf, 0.0)
    # TODO(synk): single-pass sum/sumsq here (two HBM passes avoided); large
    # per-row offsets could lose precision via E[x^2]-mean^2 cancellation.
    sum_sc[...] += jnp.sum(xf, axis=-1, keepdims=True)
    sq_sc[...] += jnp.sum(xf * xf, axis=-1, keepdims=True)

    @pl.when(j == pl.num_programs(1) - 1)
    def _():
        mean = sum_sc[...] * inv_hw
        var = jnp.maximum(sq_sc[...] * inv_hw - mean * mean, 0.0)
        inv = lax.rsqrt(var + eps)
        w = wb_ref[:, 0:1].astype(jnp.float32)
        b = wb_ref[:, 1:2].astype(jnp.float32)
        scale = inv * w
        ss_ref[:, 0:1] = scale
        ss_ref[:, 1:2] = b - mean * scale


def _apply_kernel(x_ref, ss_ref, o_ref):
    x = x_ref[...]
    scale = ss_ref[:, 0:1]
    shift = ss_ref[:, 1:2]
    if x.dtype == jnp.float32:
        o_ref[...] = (x * scale + shift).astype(o_ref.dtype)
    else:
        o_ref[...] = (x * scale.astype(x.dtype) + shift.astype(x.dtype)).astype(o_ref.dtype)


def _adain_split(xr, wb, eps, rows, hw, itemsize, sublane, block_budget, vmem_cap, dtype):
    """Stats pass + apply pass (1.5x HBM traffic) for huge H*W."""
    tr = min(_round_up(rows, sublane), 8 * sublane)
    thw = (block_budget // max(tr * itemsize, 1)) // 128 * 128
    thw = max(128, min(thw, _round_up(hw, 128)))
    n_row = pl.cdiv(rows, tr)
    n_hw = pl.cdiv(hw, thw)

    block_bytes = tr * thw * itemsize
    vmem_limit = int(min(vmem_cap, max(32 << 20, 4 * block_bytes + (4 << 20))))

    ss = pl.pallas_call(
        functools.partial(_stats_kernel, eps=eps, inv_hw=1.0 / float(hw),
                          hw_true=hw, thw=thw),
        out_shape=jax.ShapeDtypeStruct((rows, 2), jnp.float32),
        grid_spec=pltpu.PrefetchScalarGridSpec(
            num_scalar_prefetch=0,
            grid=(n_row, n_hw),
            in_specs=[
                pl.BlockSpec((tr, thw), lambda i, j: (i, j)),
                pl.BlockSpec((tr, 2), lambda i, j: (i, 0)),
            ],
            out_specs=pl.BlockSpec((tr, 2), lambda i, j: (i, 0)),
            scratch_shapes=[pltpu.VMEM((tr, 1), jnp.float32),
                            pltpu.VMEM((tr, 1), jnp.float32)],
        ),
        compiler_params=pltpu.CompilerParams(
            dimension_semantics=("parallel", "arbitrary"),
            vmem_limit_bytes=vmem_limit,
        ),
        cost_estimate=pl.CostEstimate(
            flops=3 * rows * hw, transcendentals=rows,
            bytes_accessed=rows * hw * itemsize + rows * 16),
    )(xr, wb)

    out = pl.pallas_call(
        _apply_kernel,
        out_shape=jax.ShapeDtypeStruct((rows, hw), dtype),
        grid_spec=pltpu.PrefetchScalarGridSpec(
            num_scalar_prefetch=0,
            grid=(n_row, n_hw),
            in_specs=[
                pl.BlockSpec((tr, thw), lambda i, j: (i, j)),
                pl.BlockSpec((tr, 2), lambda i, j: (i, 0)),
            ],
            out_specs=pl.BlockSpec((tr, thw), lambda i, j: (i, j)),
        ),
        compiler_params=pltpu.CompilerParams(
            dimension_semantics=("parallel", "parallel"),
            vmem_limit_bytes=vmem_limit,
        ),
        cost_estimate=pl.CostEstimate(
            flops=2 * rows * hw, transcendentals=0,
            bytes_accessed=2 * rows * hw * itemsize + rows * 8),
    )(xr, ss)
    return out


# ----------------------------------------------------------------------------
# Public wrapper (matches the PyTorch module's forward contract).
# ----------------------------------------------------------------------------

def adaptive_instance_norm_2d(x, weight, bias, *, eps=1e-5):
    """x: (B, C, H, W); weight, bias: (B*C,)."""
    B, C, H, W = x.shape
    BC, HW = B * C, H * W
    itemsize = jnp.dtype(x.dtype).itemsize
    sublane = {4: 8, 2: 16, 1: 32}.get(itemsize, 8)

    block_budget, vmem_cap = _vmem_budget()

    xr = x.reshape(BC, HW)
    wb = jnp.stack([weight.reshape(BC).astype(jnp.float32),
                    bias.reshape(BC).astype(jnp.float32)], axis=-1)

    # Only pad the instance axis when it is smaller than one sublane tile
    # (tiny tensors); otherwise Pallas masks the ragged edge row-block.
    rows = BC
    if BC < sublane:
        xr = jnp.pad(xr, ((0, sublane - BC), (0, 0)))
        wb = jnp.pad(wb, ((0, sublane - BC), (0, 0)))
        rows = sublane

    hw_pad = _round_up(HW, 128)
    min_block_bytes = sublane * hw_pad * itemsize
    if min_block_bytes > block_budget:
        # TODO(synk): for a single row tile with huge H*W both v7x TensorCores
        # could share the HW axis via a cross-core reduction; not implemented.
        out = _adain_split(xr, wb, eps, rows, HW, itemsize, sublane,
                           block_budget, vmem_cap, x.dtype)
    else:
        out = _adain_fused(xr, wb, eps, rows, HW, hw_pad, itemsize, sublane,
                           block_budget, vmem_cap, x.dtype)

    if rows != BC:
        out = out[:BC]

    # TODO(synk): running mean_buffer/var_buffer momentum update (training-time
    # side effect of F.batch_norm) is not modeled; it does not affect the output.
    return out.reshape(B, C, H, W)


def _reference(x, weight, bias, eps=1e-5):
    B, C, H, W = x.shape
    xr = x.reshape(B * C, H * W).astype(jnp.float32)
    mean = jnp.mean(xr, axis=-1, keepdims=True)
    var = jnp.mean((xr - mean) ** 2, axis=-1, keepdims=True)
    out = (xr - mean) / jnp.sqrt(var + eps)
    out = out * weight.reshape(-1, 1) + bias.reshape(-1, 1)
    return out.reshape(B, C, H, W).astype(x.dtype)


if __name__ == "__main__":
    key = jax.random.PRNGKey(0)

    # Test 1: aligned shapes (BC multiple of sublane, HW multiple of 128).
    B, C, H, W = 2, 4, 16, 16
    kx, kw, kb, k2, k3 = jax.random.split(key, 5)
    x = jax.random.normal(kx, (B, C, H, W), dtype=jnp.float32)
    weight = jax.random.normal(kw, (B * C,), dtype=jnp.float32)
    bias = jax.random.normal(kb, (B * C,), dtype=jnp.float32)
    out = jax.block_until_ready(adaptive_instance_norm_2d(x, weight, bias, eps=1e-5))
    ref = _reference(x, weight, bias, eps=1e-5)
    assert out.shape == (B, C, H, W)
    assert jnp.allclose(out, ref, atol=1e-4, rtol=1e-4)

    # Test 2: BC smaller than a sublane tile.
    B2, C2, H2, W2 = 1, 3, 8, 16
    k2x, k2w, k2b = jax.random.split(k2, 3)
    x2 = jax.random.normal(k2x, (B2, C2, H2, W2), dtype=jnp.float32)
    w2 = jax.random.normal(k2w, (B2 * C2,), dtype=jnp.float32)
    b2 = jax.random.normal(k2b, (B2 * C2,), dtype=jnp.float32)
    out2 = jax.block_until_ready(adaptive_instance_norm_2d(x2, w2, b2, eps=1e-5))
    ref2 = _reference(x2, w2, b2, eps=1e-5)
    assert jnp.allclose(out2, ref2, atol=1e-4, rtol=1e-4)

    # Test 3: ragged BC (edge row-block masking) + HW not a multiple of 128
    # (lane-dense pad path with variance correction).
    B3, C3, H3, W3 = 2, 5, 7, 7
    k3x, k3w, k3b, k4 = jax.random.split(k3, 4)
    x3 = jax.random.normal(k3x, (B3, C3, H3, W3), dtype=jnp.float32)
    w3 = jax.random.normal(k3w, (B3 * C3,), dtype=jnp.float32)
    b3 = jax.random.normal(k3b, (B3 * C3,), dtype=jnp.float32)
    out3 = jax.block_until_ready(adaptive_instance_norm_2d(x3, w3, b3, eps=1e-5))
    ref3 = _reference(x3, w3, b3, eps=1e-5)
    assert jnp.allclose(out3, ref3, atol=1e-4, rtol=1e-4)

    # Test 4: force the two-pass (HW-split) path with a tiny block budget so the
    # multi-tile accumulation and HW-edge masking are exercised at small shapes.
    B4, C4, H4, W4 = 2, 4, 16, 20          # HW = 320 -> 3 tiles of 128 (last partial)
    k4x, k4w, k4b = jax.random.split(k4, 3)
    x4 = jax.random.normal(k4x, (B4, C4, H4, W4), dtype=jnp.float32)
    w4 = jax.random.normal(k4w, (B4 * C4,), dtype=jnp.float32)
    b4 = jax.random.normal(k4b, (B4 * C4,), dtype=jnp.float32)
    xr4 = x4.reshape(B4 * C4, H4 * W4)
    wb4 = jnp.stack([w4, b4], axis=-1)
    out4 = _adain_split(xr4, wb4, 1e-5, B4 * C4, H4 * W4, itemsize=4, sublane=8,
                        block_budget=8 * 128 * 4, vmem_cap=48 << 20,
                        dtype=jnp.float32)
    out4 = jax.block_until_ready(out4)
    ref4 = _reference(x4, w4, b4, 1e-5).reshape(B4 * C4, H4 * W4)
    assert jnp.allclose(out4, ref4, atol=1e-4, rtol=1e-4)

    print("KERNEL_OK")
</pallas_src>

<mosaic_0001>
module attributes {stable_mosaic.version = 11 : i64} {
  func.func @_adain_kernel(%arg0: i32, %arg1: memref<8x256xf32, #tpu.memory_space<vmem>>, %arg2: memref<8x2xf32, #tpu.memory_space<vmem>>, %arg3: memref<8x256xf32, #tpu.memory_space<vmem>>) attributes {dimension_semantics = [#tpu.dimension_semantics<parallel>], iteration_bounds = array<i64: 1>, scalar_prefetch = 0 : i64, scratch_operands = 0 : i64, tpu.core_type = #tpu.core_type<tc>, window_params = [{transform_indices = @transform_0, window_bounds = array<i64: 8, 256>}, {pipeline_mode = #tpu.pipeline_mode<synchronous>, transform_indices = @transform_1, window_bounds = array<i64: 8, 2>}, {transform_indices = @transform_2, window_bounds = array<i64: 8, 256>}]} {
    %c0 = arith.constant 0 : index
    %c0_0 = arith.constant 0 : index
    %0 = vector.load %arg1[%c0, %c0_0] : memref<8x256xf32, #tpu.memory_space<vmem>>, vector<8x256xf32>
    %cst = arith.constant dense<0.000000e+00> : vector<8xf32>
    %1 = vector.multi_reduction <add>, %0, %cst [1] : vector<8x256xf32> to vector<8xf32>
    %2 = vector.shape_cast %1 : vector<8xf32> to vector<8x1xf32>
    %cst_1 = arith.constant 3.906250e-03 : f32
    %3 = vector.broadcast %cst_1 : f32 to vector<8x1xf32>
    %4 = arith.mulf %2, %3 : vector<8x1xf32>
    %5 = vector.broadcast %4 : vector<8x1xf32> to vector<8x256xf32>
    %6 = arith.subf %0, %5 : vector<8x256xf32>
    %7 = arith.mulf %6, %6 : vector<8x256xf32>
    %cst_2 = arith.constant dense<0.000000e+00> : vector<8xf32>
    %8 = vector.multi_reduction <add>, %7, %cst_2 [1] : vector<8x256xf32> to vector<8xf32>
    %9 = vector.shape_cast %8 : vector<8xf32> to vector<8x1xf32>
    %cst_3 = arith.constant 3.906250e-03 : f32
    %10 = vector.broadcast %cst_3 : f32 to vector<8x1xf32>
    %11 = arith.mulf %9, %10 : vector<8x1xf32>
    %cst_4 = arith.constant 0.000000e+00 : f32
    %12 = vector.broadcast %cst_4 : f32 to vector<8x1xf32>
    %13 = arith.maximumf %11, %12 : vector<8x1xf32>
    %cst_5 = arith.constant 9.99999974E-6 : f32
    %14 = vector.broadcast %cst_5 : f32 to vector<8x1xf32>
    %15 = arith.addf %13, %14 : vector<8x1xf32>
    %16 = math.rsqrt %15 : vector<8x1xf32>
    %c8_i32 = arith.constant 8 : i32
    %17 = arith.muli %arg0, %c8_i32 : i32
    %18 = tpu.assume_multiple %17, 8 : i32
    %19 = arith.index_cast %18 : i32 to index
    %c0_6 = arith.constant 0 : index
    %20 = vector.load %arg2[%19, %c0_6] : memref<8x2xf32, #tpu.memory_space<vmem>>, vector<8x2xf32>
    %21 = vector.extract_strided_slice %20 {offsets = [0, 0], sizes = [8, 1], strides = [1, 1]} : vector<8x2xf32> to vector<8x1xf32>
    %22 = vector.extract_strided_slice %20 {offsets = [0, 1], sizes = [8, 1], strides = [1, 1]} : vector<8x2xf32> to vector<8x1xf32>
    %23 = arith.mulf %16, %21 : vector<8x1xf32>
    %24 = arith.mulf %4, %23 : vector<8x1xf32>
    %25 = arith.subf %22, %24 : vector<8x1xf32>
    %26 = vector.broadcast %23 : vector<8x1xf32> to vector<8x256xf32>
    %27 = arith.mulf %0, %26 : vector<8x256xf32>
    %28 = vector.broadcast %25 : vector<8x1xf32> to vector<8x256xf32>
    %29 = arith.addf %27, %28 : vector<8x256xf32>
    %c0_7 = arith.constant 0 : index
    %c0_8 = arith.constant 0 : index
    %30 = vector.load %arg3[%c0_7, %c0_8] : memref<8x256xf32, #tpu.memory_space<vmem>>, vector<8x256xf32>
    tpu.vector_store %arg3[%c0_7, %c0_8], %29 {strides = array<i32>} : memref<8x256xf32, #tpu.memory_space<vmem>>, vector<8x256xf32>,
    return
  }
  func.func @transform_0(%arg0: i32) -> (i32, i32) {
    %c0_i32 = arith.constant 0 : i32
    %c0_i32_0 = arith.constant 0 : i32
    return %arg0, %c0_i32 : i32, i32
  }
  func.func @transform_1(%arg0: i32) -> (i32, i32) {
    %c0_i32 = arith.constant 0 : i32
    %c0_i32_0 = arith.constant 0 : i32
    %c0_i32_1 = arith.constant 0 : i32
    return %c0_i32, %c0_i32_0 : i32, i32
  }
  func.func @transform_2(%arg0: i32) -> (i32, i32) {
    %c0_i32 = arith.constant 0 : i32
    %c0_i32_0 = arith.constant 0 : i32
    return %arg0, %c0_i32 : i32, i32
  }
}

</mosaic_0001>

<bundles_post_ra>
// kernel: tpu_custom_call.1
= control target key start
LH: loop header
LB: loop body
LE: loop exit
PB: predicated region body
PF: predicated region fallthrough
CT: control target
= control target key end

     0   :  { %7 = vsyncpa [#allocation3], 0  ;;  %s164_s0 = inlined_call_operand.hbm [shape: f32[8,256], index: 0, kind: input, shape index: {}]   ;;  %s165_s1 = inlined_call_operand.vmem [shape: f32[8,2], index: 1, kind: input, shape index: {}]   ;;  %s166_s2 = inlined_call_operand.hbm [shape: f32[8,256], index: 2, kind: output, shape index: {}]  }
   0x1   :  { %8 = vsyncpa [#allocation4], 0  ;;  %s135_s9 = smov [#allocation2]  }
   0x2   :  { %s15_s10 = sshll.u32 %s135_s9, 4  ;;  %s16_s10 = int_to_ptr.vmem [resolvable:$true] %s15_s10 }
   0x3   :  { %s99_s11 = scalar_lea.vmem %s16_s10, 256  ;;  %p104_p1 = scmp.lt.s32.totalorder %s16_s10, %s16_s10 }
   0x4   :  { %p100_p0 = scmp.ne.s32.totalorder %s16_s10, %s99_s11  ;;  %p105_p2 = scmp.lt.s32.totalorder %s99_s11, %s99_s11 }
   0x6   :  { %p106_p3 = por %p105_p2, %p104_p1 }
   0x8   :  { %p107_p4 = pnand %p106_p3, %p100_p0 }
   0xa   :  { %110 = shalt.err (!%p107_p4)
}
   0xb   :  { %18 = dma.hbm_to_vmem [thread:$0]  %s164_s0, 256, %s16_s10, [#allocation3]  }
   0xc   :  { %131 = dma.done.wait [#allocation3], 256  }
   0xd   :  { %132 = vsyncadd [#allocation3], 4294967040  ;;  %v24_v0 = vld [vmem:[#allocation2] sm:$0xff]  ;;  %v25_v1 = vld [vmem:[#allocation2 + $0x8] sm:$0xff]  ;;  %v136_v10 = vmov 0   ;;  %v137_v15 = vmov 1  }
   0xe   :  { %v26_v2 = vadd.f32 %v25_v1, %v24_v0  ;;  %87 = vset.pattern.permute.xlu1 %v136_v10  ;;  %88 = vset.pattern.permute.xlu0 %v137_v15  ;;  %v43_v16 = vld [vmem:[%s165_s1] sm:$0xff]  ;;  %s138_s15 = smov 1   ;;  %s139_s16 = smov [#allocation5]  }
   0xf   :  { %s73_s17 = sshll.u32 %s139_s16, 4  ;;  %s74_s17 = int_to_ptr.vmem [resolvable:$true] %s73_s17 }
  0x10   :  { %27 = vadd.xlane.f32.xlu0 %v26_v2  ;;  %s111_s1 = scalar_lea.vmem %s74_s17, 256  ;;  %p116_p6 = scmp.lt.s32.totalorder %s74_s17, %s74_s17 }
  0x11   :  { %p112_p5 = scmp.ne.s32.totalorder %s74_s17, %s111_s1  ;;  %p117_p7 = scmp.lt.s32.totalorder %s111_s1, %s111_s1 }
  0x13   :  { %p118_p8 = por %p117_p7, %p116_p6 }
  0x15   :  { %p119_p9 = pnand %p118_p8, %p112_p5 }
  0x99   :  { %v28_v3 = vpop.xlane.xlu0 %27 }
  0x9a   :  { %v29_v4 = vmul.f32 0.00390625, %v28_v3 }
  0x9c   :  { %v30_v5 = vsub.f32 %v24_v0, %v29_v4  ;;  %v31_v6 = vsub.f32 %v25_v1, %v29_v4 }
  0x9e   :  { %v32_v7 = vmul.f32 %v30_v5, %v30_v5  ;;  %v33_v8 = vmul.f32 %v31_v6, %v31_v6 }
  0xa0   :  { %v34_v9 = vadd.f32 %v33_v8, %v32_v7 }
  0xa2   :  { %35 = vadd.xlane.f32.xlu0 %v34_v9 }
 0x12b   :  { %v36_v11 = vpop.xlane.xlu0 %35 }
 0x12c   :  { %v37_v12 = vmul.f32 0.00390625, %v36_v11 }
 0x12e   :  { %v38_v13 = vmax.f32 %v37_v12, 0.0 }
 0x130   :  { %v39_v14 = vadd.f32 1e-05, %v38_v13 }
 0x132   :  { %89 = vrsqrt.f32 %v39_v14 }
 0x13f   :  { %v90_v17 = vpop.eup %89 }
 0x140   :  { %v44_v18 = vmul.f32 %v90_v17, %v43_v16 }
 0x142   :  { %v45_v19 = vmul.f32 %v44_v18, %v29_v4 }
 0x144   :  { %47 = vrot.lane.b32.xlu1 %v45_v19, %s138_s15 }
 0x148   :  { %53 = vperm.xlu1 %87, %v44_v18  }
 0x1b6   :  { %v48_v20 = vpop.permute.xlu1 %47 }
 0x1b7   :  { %v50_v21 = vsub.f32 %v43_v16, %v48_v20 }
 0x1b9   :  { %60 = vperm.xlu0 %88, %v50_v21  }
 0x1c3   :  { %v54_v22 = vpop.permute.xlu1 %53 }
 0x1c4   :  { %v56_v23 = vmul.f32 %v54_v22, %v24_v0  ;;  %v57_v24 = vmul.f32 %v54_v22, %v25_v1 }
 0x234   :  { %v61_v25 = vpop.permute.xlu0 %60 }
 0x235   :  { %v63_v26 = vadd.f32 %v61_v25, %v56_v23  ;;  %v64_v27 = vadd.f32 %v61_v25, %v57_v24 }
 0x237   :  { %65 = vst [vmem:[#allocation5] sm:$0xff] %v63_v26  ;;  %66 = vst [vmem:[#allocation5 + $0x8] sm:$0xff] %v64_v27 }
 0x238   :  { %122 = shalt.err (!%p119_p9)
}
 0x239   :  { %76 = dma.vmem_to_hbm [thread:$0]  %s74_s17, 256, %s166_s2, [#allocation4]  }
 0x23a   :  { %133 = dma.done.wait [#allocation4], 256  }
 0x23b   :  { %134 = vsyncadd [#allocation4], 4294967040 }
 0x23c   :  { %80 = vsyncpa [#allocation3], 1 }
 0x23d   :  { %81 = vsyncpa [#allocation4], 1 }

</bundles_post_ra>
